<compile_context>
chip_gen: v5e
topology: v5e:2x2
jax: 0.10.0
libtpu: 0.0.40
codegen_flags: <defaults>
</compile_context>

<pallas_src>
import math

import jax
import jax.numpy as jnp
from jax.experimental import pallas as pl
from jax.experimental.pallas import tpu as pltpu

EMBED_DIM = 32
NUM_HEADS = 4
HEAD_DIM = EMBED_DIM // NUM_HEADS
MLP_RATIO = 4.0
HIDDEN_DIM = int(EMBED_DIM * MLP_RATIO)
BATCH = 2
SEQ = 8
LN_EPS = 1e-5

# dot_general dimension numbers for "A @ B.T" without an explicit transpose.
_TRANS_B = (((1,), (1,)), ((), ()))


def _layer_norm(x, g, b):
    mean = jnp.mean(x, axis=-1, keepdims=True)
    var = jnp.mean((x - mean) ** 2, axis=-1, keepdims=True)
    return (x - mean) * jax.lax.rsqrt(var + LN_EPS) * g + b


def _bf16(t):
    return t.astype(jnp.bfloat16)


def encoder_block_kernel(x_ref, qkvp_ref, mlp1_ref, misc_ref, o_ref):
    E, H, D, N, B = EMBED_DIM, NUM_HEADS, HEAD_DIM, SEQ, BATCH

    x = x_ref[...]                                             # (B*N, E) f32

    # ---- unpack parameter slabs (static, sublane-aligned slices) ----
    w_in = _bf16(qkvp_ref[0:E, :])                             # (E, 3E)
    b_in = qkvp_ref[E:E + 1, :]                                # (1, 3E) f32
    w1 = _bf16(mlp1_ref[0:E, :])                               # (E, HIDDEN)
    b1 = mlp1_ref[E:E + 1, :]                                  # (1, HIDDEN) f32
    w_out = _bf16(misc_ref[0:E, :])                            # (E, E)
    w2 = _bf16(misc_ref[E:E + HIDDEN_DIM, :])                  # (HIDDEN, E)
    vecs = misc_ref[E + HIDDEN_DIM:E + HIDDEN_DIM + 6, :]      # (6, E) f32
    ln1_g, ln1_b = vecs[0:1, :], vecs[1:2, :]
    ln2_g, ln2_b = vecs[2:3, :], vecs[3:4, :]
    b_out, b2 = vecs[4:5, :], vecs[5:6, :]

    # ---- LayerNorm 1 over all batch rows at once ----
    xn = _layer_norm(x, ln1_g, ln1_b)                          # (B*N, E) f32

    # ---- packed QKV projection: ONE (B*N,E)@(E,3E) MXU push + one bias add ----
    qkv = jnp.dot(_bf16(xn), w_in,
                  preferred_element_type=jnp.float32) + b_in   # (B*N, 3E) f32
    scale = 1.0 / math.sqrt(D)
    q = _bf16(qkv[:, 0:E] * scale)                             # (B*N, E) bf16
    k = _bf16(qkv[:, E:2 * E])
    v = _bf16(qkv[:, 2 * E:3 * E])

    # ---- per-(batch, head) scores, stacked on sublanes for one softmax pass ----
    score_blocks = []
    for b in range(B):
        r = slice(b * N, (b + 1) * N)                          # sublane-aligned
        for h in range(H):
            c = slice(h * D, (h + 1) * D)                      # lane chunk
            score_blocks.append(jax.lax.dot_general(
                q[r, c], k[r, c], _TRANS_B,
                preferred_element_type=jnp.float32))           # (N, N)
    scores = jnp.concatenate(score_blocks, axis=0)             # (B*H*N, N)

    m = jnp.max(scores, axis=-1, keepdims=True)
    e = jnp.exp(scores - m)
    p = _bf16(e / jnp.sum(e, axis=-1, keepdims=True))          # exact softmax

    # ---- contexts lane-concatenated (heads on lanes), then ONE out-projection ----
    ctx_rows = []
    for b in range(B):
        r = slice(b * N, (b + 1) * N)
        ctx_heads = []
        for h in range(H):
            idx = b * H + h
            p_bh = p[idx * N:(idx + 1) * N, :]                 # (N, N) bf16
            v_bh = v[r, h * D:(h + 1) * D]                     # (N, D) bf16
            ctx_heads.append(jnp.dot(p_bh, v_bh,
                                     preferred_element_type=jnp.float32))
        ctx_rows.append(jnp.concatenate(ctx_heads, axis=1))    # (N, E)
    ctx = jnp.concatenate(ctx_rows, axis=0)                    # (B*N, E) f32

    attn = jnp.dot(_bf16(ctx), w_out,
                   preferred_element_type=jnp.float32) + b_out
    x1 = x + attn                                              # residual 1

    # ---- LayerNorm 2 + MLP (exact-erf GELU, matching nn.GELU default) ----
    xn2 = _layer_norm(x1, ln2_g, ln2_b)
    hid = jnp.dot(_bf16(xn2), w1,
                  preferred_element_type=jnp.float32) + b1     # (B*N, HIDDEN)
    hid = 0.5 * hid * (1.0 + jax.lax.erf(hid * (1.0 / math.sqrt(2.0))))
    mlp = jnp.dot(_bf16(hid), w2,
                  preferred_element_type=jnp.float32) + b2     # (B*N, E)

    o_ref[...] = (x1 + mlp).astype(o_ref.dtype)                # residual 2


@jax.jit
def transformer_encoder_block(x, params):
    (ln1_g, ln1_b, w_in_t, b_in, w_out_t, b_out,
     ln2_g, ln2_b, w1_t, b1, w2_t, b2) = params
    B, N, E = x.shape

    # Pack the parameters into three slabs of uniform lane width (free XLA
    # concats) so the kernel launch carries 4 inputs instead of 13.
    qkv_pack = jnp.concatenate([w_in_t, b_in], axis=0)              # (E+1, 3E)
    mlp1_pack = jnp.concatenate([w1_t, b1], axis=0)                 # (E+1, HIDDEN)
    misc_pack = jnp.concatenate(
        [w_out_t, w2_t, ln1_g, ln1_b, ln2_g, ln2_b, b_out, b2],
        axis=0)                                                     # (E+HIDDEN+6, E)

    x2 = x.reshape(B * N, E)        # fold batch onto the sublane axis

    vmem = pl.BlockSpec(memory_space=pltpu.MemorySpace.VMEM)
    out2 = pl.pallas_call(
        encoder_block_kernel,
        out_shape=jax.ShapeDtypeStruct((B * N, E), x.dtype),
        # Gridless call: each whole array is mapped once into VMEM (<100 KB
        # total), so there is no pipeline bookkeeping and no double buffering.
        in_specs=[vmem, vmem, vmem, vmem],
        out_specs=vmem,
    )(x2, qkv_pack, mlp1_pack, misc_pack)
    return out2.reshape(B, N, E), None


def make_params(key):
    ks = jax.random.split(key, 8)
    scale = 0.05
    ln1_g = jnp.ones((1, EMBED_DIM), jnp.float32)
    ln1_b = jnp.zeros((1, EMBED_DIM), jnp.float32)
    # attn.in_proj_weight is (3E, E) in torch; we store its transpose (E, 3E).
    w_in_t = scale * jax.random.normal(ks[0], (EMBED_DIM, 3 * EMBED_DIM), jnp.float32)
    b_in = scale * jax.random.normal(ks[1], (1, 3 * EMBED_DIM), jnp.float32)
    # attn.out_proj.weight is (E, E); stored transposed.
    w_out_t = scale * jax.random.normal(ks[2], (EMBED_DIM, EMBED_DIM), jnp.float32)
    b_out = scale * jax.random.normal(ks[3], (1, EMBED_DIM), jnp.float32)
    ln2_g = jnp.ones((1, EMBED_DIM), jnp.float32)
    ln2_b = jnp.zeros((1, EMBED_DIM), jnp.float32)
    w1_t = scale * jax.random.normal(ks[4], (EMBED_DIM, HIDDEN_DIM), jnp.float32)
    b1 = scale * jax.random.normal(ks[5], (1, HIDDEN_DIM), jnp.float32)
    w2_t = scale * jax.random.normal(ks[6], (HIDDEN_DIM, EMBED_DIM), jnp.float32)
    b2 = scale * jax.random.normal(ks[7], (1, EMBED_DIM), jnp.float32)
    return (ln1_g, ln1_b, w_in_t, b_in, w_out_t, b_out,
            ln2_g, ln2_b, w1_t, b1, w2_t, b2)


def ref_forward(x, params):
    (ln1_g, ln1_b, w_in_t, b_in, w_out_t, b_out,
     ln2_g, ln2_b, w1_t, b1, w2_t, b2) = params

    def ln(t, g, b):
        m = t.mean(-1, keepdims=True)
        v = ((t - m) ** 2).mean(-1, keepdims=True)
        return (t - m) / jnp.sqrt(v + LN_EPS) * g + b

    xn = ln(x, ln1_g, ln1_b)
    qkv = xn @ w_in_t + b_in
    q, k, v = jnp.split(qkv, 3, axis=-1)

    def heads(t):
        B, N, _ = t.shape
        return t.reshape(B, N, NUM_HEADS, HEAD_DIM).transpose(0, 2, 1, 3)

    qh, kh, vh = heads(q), heads(k), heads(v)
    s = (qh / math.sqrt(HEAD_DIM)) @ kh.transpose(0, 1, 3, 2)
    p = jax.nn.softmax(s, axis=-1)
    o = (p @ vh).transpose(0, 2, 1, 3).reshape(x.shape)
    attn = o @ w_out_t + b_out
    x1 = x + attn
    xn2 = ln(x1, ln2_g, ln2_b)
    h = xn2 @ w1_t + b1
    h = 0.5 * h * (1.0 + jax.lax.erf(h / math.sqrt(2.0)))
    return x1 + h @ w2_t + b2


if __name__ == "__main__":
    key = jax.random.PRNGKey(0)
    kx, kp = jax.random.split(key)
    x = jax.random.normal(kx, (BATCH, SEQ, EMBED_DIM), jnp.float32)
    params = make_params(kp)

    out, _ = transformer_encoder_block(x, params)
    out = jax.block_until_ready(out)
    expected = ref_forward(x, params)

    assert out.shape == (BATCH, SEQ, EMBED_DIM)
    max_err = float(jnp.max(jnp.abs(out - expected)))
    assert jnp.allclose(out, expected, rtol=1e-3, atol=1e-3), max_err
    print("KERNEL_OK")
</pallas_src>

<mosaic_0001>
module attributes {stable_mosaic.version = 11 : i64} {
  func.func @encoder_block_kernel(%arg0: memref<16x32xf32, #tpu.memory_space<vmem>>, %arg1: memref<33x96xf32, #tpu.memory_space<vmem>>, %arg2: memref<33x128xf32, #tpu.memory_space<vmem>>, %arg3: memref<166x32xf32, #tpu.memory_space<vmem>>, %arg4: memref<16x32xf32, #tpu.memory_space<vmem>>) attributes {dimension_semantics = [], scalar_prefetch = 0 : i64, scratch_operands = 0 : i64, tpu.core_type = #tpu.core_type<tc>} {
    %c0 = arith.constant 0 : index
    %c0_0 = arith.constant 0 : index
    %0 = vector.load %arg0[%c0, %c0_0] : memref<16x32xf32, #tpu.memory_space<vmem>>, vector<16x32xf32>
    %c0_1 = arith.constant 0 : index
    %c0_2 = arith.constant 0 : index
    %1 = vector.load %arg1[%c0_1, %c0_2] : memref<33x96xf32, #tpu.memory_space<vmem>>, vector<32x96xf32>
    %2 = arith.truncf %1 : vector<32x96xf32> to vector<32x96xbf16>
    %c32 = arith.constant 32 : index
    %c0_3 = arith.constant 0 : index
    %3 = vector.load %arg1[%c32, %c0_3] : memref<33x96xf32, #tpu.memory_space<vmem>>, vector<1x96xf32>
    %c0_4 = arith.constant 0 : index
    %c0_5 = arith.constant 0 : index
    %4 = vector.load %arg2[%c0_4, %c0_5] : memref<33x128xf32, #tpu.memory_space<vmem>>, vector<32x128xf32>
    %5 = arith.truncf %4 : vector<32x128xf32> to vector<32x128xbf16>
    %c32_6 = arith.constant 32 : index
    %c0_7 = arith.constant 0 : index
    %6 = vector.load %arg2[%c32_6, %c0_7] : memref<33x128xf32, #tpu.memory_space<vmem>>, vector<1x128xf32>
    %c0_8 = arith.constant 0 : index
    %c0_9 = arith.constant 0 : index
    %7 = vector.load %arg3[%c0_8, %c0_9] : memref<166x32xf32, #tpu.memory_space<vmem>>, vector<32x32xf32>
    %8 = arith.truncf %7 : vector<32x32xf32> to vector<32x32xbf16>
    %c32_10 = arith.constant 32 : index
    %c0_11 = arith.constant 0 : index
    %9 = vector.load %arg3[%c32_10, %c0_11] : memref<166x32xf32, #tpu.memory_space<vmem>>, vector<128x32xf32>
    %10 = arith.truncf %9 : vector<128x32xf32> to vector<128x32xbf16>
    %c160 = arith.constant 160 : index
    %c0_12 = arith.constant 0 : index
    %11 = vector.load %arg3[%c160, %c0_12] : memref<166x32xf32, #tpu.memory_space<vmem>>, vector<6x32xf32>
    %12 = vector.extract_strided_slice %11 {offsets = [0, 0], sizes = [1, 32], strides = [1, 1]} : vector<6x32xf32> to vector<1x32xf32>
    %13 = vector.extract_strided_slice %11 {offsets = [1, 0], sizes = [1, 32], strides = [1, 1]} : vector<6x32xf32> to vector<1x32xf32>
    %14 = vector.extract_strided_slice %11 {offsets = [2, 0], sizes = [1, 32], strides = [1, 1]} : vector<6x32xf32> to vector<1x32xf32>
    %15 = vector.extract_strided_slice %11 {offsets = [3, 0], sizes = [1, 32], strides = [1, 1]} : vector<6x32xf32> to vector<1x32xf32>
    %16 = vector.extract_strided_slice %11 {offsets = [4, 0], sizes = [1, 32], strides = [1, 1]} : vector<6x32xf32> to vector<1x32xf32>
    %17 = vector.extract_strided_slice %11 {offsets = [5, 0], sizes = [1, 32], strides = [1, 1]} : vector<6x32xf32> to vector<1x32xf32>
    %cst = arith.constant dense<0.000000e+00> : vector<16xf32>
    %18 = vector.multi_reduction <add>, %0, %cst [1] : vector<16x32xf32> to vector<16xf32>
    %19 = vector.shape_cast %18 : vector<16xf32> to vector<16x1xf32>
    %cst_13 = arith.constant 3.200000e+01 : f32
    %20 = vector.broadcast %cst_13 : f32 to vector<16x1xf32>
    %21 = arith.divf %19, %20 : vector<16x1xf32>
    %22 = vector.broadcast %21 : vector<16x1xf32> to vector<16x32xf32>
    %23 = arith.subf %0, %22 : vector<16x32xf32>
    %24 = arith.mulf %23, %23 : vector<16x32xf32>
    %cst_14 = arith.constant dense<0.000000e+00> : vector<16xf32>
    %25 = vector.multi_reduction <add>, %24, %cst_14 [1] : vector<16x32xf32> to vector<16xf32>
    %26 = vector.shape_cast %25 : vector<16xf32> to vector<16x1xf32>
    %cst_15 = arith.constant 3.200000e+01 : f32
    %27 = vector.broadcast %cst_15 : f32 to vector<16x1xf32>
    %28 = arith.divf %26, %27 : vector<16x1xf32>
    %29 = vector.broadcast %21 : vector<16x1xf32> to vector<16x32xf32>
    %30 = arith.subf %0, %29 : vector<16x32xf32>
    %cst_16 = arith.constant 9.99999974E-6 : f32
    %31 = vector.broadcast %cst_16 : f32 to vector<16x1xf32>
    %32 = arith.addf %28, %31 : vector<16x1xf32>
    %33 = math.rsqrt %32 : vector<16x1xf32>
    %34 = vector.broadcast %33 : vector<16x1xf32> to vector<16x32xf32>
    %35 = arith.mulf %30, %34 : vector<16x32xf32>
    %36 = vector.broadcast %12 : vector<1x32xf32> to vector<16x32xf32>
    %37 = arith.mulf %35, %36 : vector<16x32xf32>
    %38 = vector.broadcast %13 : vector<1x32xf32> to vector<16x32xf32>
    %39 = arith.addf %37, %38 : vector<16x32xf32>
    %40 = arith.truncf %39 : vector<16x32xf32> to vector<16x32xbf16>
    %cst_17 = arith.constant dense<0.000000e+00> : vector<16x96xf32>
    %41 = tpu.matmul %40, %2, %cst_17 {dimension_numbers = #tpu.dot_dimension_numbers<[1], [0], [0], [1], [0, 0, 1, 1], [], []>} : vector<16x32xbf16>, vector<32x96xbf16>, vector<16x96xf32> -> vector<16x96xf32>
    %42 = vector.broadcast %3 : vector<1x96xf32> to vector<16x96xf32>
    %43 = arith.addf %41, %42 : vector<16x96xf32>
    %44 = vector.extract_strided_slice %43 {offsets = [0, 0], sizes = [16, 32], strides = [1, 1]} : vector<16x96xf32> to vector<16x32xf32>
    %cst_18 = arith.constant 0.353553385 : f32
    %45 = vector.broadcast %cst_18 : f32 to vector<16x32xf32>
    %46 = arith.mulf %44, %45 : vector<16x32xf32>
    %47 = arith.truncf %46 : vector<16x32xf32> to vector<16x32xbf16>
    %48 = vector.extract_strided_slice %43 {offsets = [0, 32], sizes = [16, 32], strides = [1, 1]} : vector<16x96xf32> to vector<16x32xf32>
    %49 = arith.truncf %48 : vector<16x32xf32> to vector<16x32xbf16>
    %50 = vector.extract_strided_slice %43 {offsets = [0, 64], sizes = [16, 32], strides = [1, 1]} : vector<16x96xf32> to vector<16x32xf32>
    %51 = arith.truncf %50 : vector<16x32xf32> to vector<16x32xbf16>
    %52 = vector.extract_strided_slice %47 {offsets = [0, 0], sizes = [8, 8], strides = [1, 1]} : vector<16x32xbf16> to vector<8x8xbf16>
    %53 = vector.extract_strided_slice %49 {offsets = [0, 0], sizes = [8, 8], strides = [1, 1]} : vector<16x32xbf16> to vector<8x8xbf16>
    %cst_19 = arith.constant dense<0.000000e+00> : vector<8x8xf32>
    %54 = tpu.matmul %52, %53, %cst_19 {dimension_numbers = #tpu.dot_dimension_numbers<[1], [1], [0], [0], [0, 0, 1, 0], [], []>} : vector<8x8xbf16>, vector<8x8xbf16>, vector<8x8xf32> -> vector<8x8xf32>
    %55 = vector.extract_strided_slice %47 {offsets = [0, 8], sizes = [8, 8], strides = [1, 1]} : vector<16x32xbf16> to vector<8x8xbf16>
    %56 = vector.extract_strided_slice %49 {offsets = [0, 8], sizes = [8, 8], strides = [1, 1]} : vector<16x32xbf16> to vector<8x8xbf16>
    %cst_20 = arith.constant dense<0.000000e+00> : vector<8x8xf32>
    %57 = tpu.matmul %55, %56, %cst_20 {dimension_numbers = #tpu.dot_dimension_numbers<[1], [1], [0], [0], [0, 0, 1, 0], [], []>} : vector<8x8xbf16>, vector<8x8xbf16>, vector<8x8xf32> -> vector<8x8xf32>
    %58 = vector.extract_strided_slice %47 {offsets = [0, 16], sizes = [8, 8], strides = [1, 1]} : vector<16x32xbf16> to vector<8x8xbf16>
    %59 = vector.extract_strided_slice %49 {offsets = [0, 16], sizes = [8, 8], strides = [1, 1]} : vector<16x32xbf16> to vector<8x8xbf16>
    %cst_21 = arith.constant dense<0.000000e+00> : vector<8x8xf32>
    %60 = tpu.matmul %58, %59, %cst_21 {dimension_numbers = #tpu.dot_dimension_numbers<[1], [1], [0], [0], [0, 0, 1, 0], [], []>} : vector<8x8xbf16>, vector<8x8xbf16>, vector<8x8xf32> -> vector<8x8xf32>
    %61 = vector.extract_strided_slice %47 {offsets = [0, 24], sizes = [8, 8], strides = [1, 1]} : vector<16x32xbf16> to vector<8x8xbf16>
    %62 = vector.extract_strided_slice %49 {offsets = [0, 24], sizes = [8, 8], strides = [1, 1]} : vector<16x32xbf16> to vector<8x8xbf16>
    %cst_22 = arith.constant dense<0.000000e+00> : vector<8x8xf32>
    %63 = tpu.matmul %61, %62, %cst_22 {dimension_numbers = #tpu.dot_dimension_numbers<[1], [1], [0], [0], [0, 0, 1, 0], [], []>} : vector<8x8xbf16>, vector<8x8xbf16>, vector<8x8xf32> -> vector<8x8xf32>
    %64 = vector.extract_strided_slice %47 {offsets = [8, 0], sizes = [8, 8], strides = [1, 1]} : vector<16x32xbf16> to vector<8x8xbf16>
    %65 = vector.extract_strided_slice %49 {offsets = [8, 0], sizes = [8, 8], strides = [1, 1]} : vector<16x32xbf16> to vector<8x8xbf16>
    %cst_23 = arith.constant dense<0.000000e+00> : vector<8x8xf32>
    %66 = tpu.matmul %64, %65, %cst_23 {dimension_numbers = #tpu.dot_dimension_numbers<[1], [1], [0], [0], [0, 0, 1, 0], [], []>} : vector<8x8xbf16>, vector<8x8xbf16>, vector<8x8xf32> -> vector<8x8xf32>
    %67 = vector.extract_strided_slice %47 {offsets = [8, 8], sizes = [8, 8], strides = [1, 1]} : vector<16x32xbf16> to vector<8x8xbf16>
    %68 = vector.extract_strided_slice %49 {offsets = [8, 8], sizes = [8, 8], strides = [1, 1]} : vector<16x32xbf16> to vector<8x8xbf16>
    %cst_24 = arith.constant dense<0.000000e+00> : vector<8x8xf32>
    %69 = tpu.matmul %67, %68, %cst_24 {dimension_numbers = #tpu.dot_dimension_numbers<[1], [1], [0], [0], [0, 0, 1, 0], [], []>} : vector<8x8xbf16>, vector<8x8xbf16>, vector<8x8xf32> -> vector<8x8xf32>
    %70 = vector.extract_strided_slice %47 {offsets = [8, 16], sizes = [8, 8], strides = [1, 1]} : vector<16x32xbf16> to vector<8x8xbf16>
    %71 = vector.extract_strided_slice %49 {offsets = [8, 16], sizes = [8, 8], strides = [1, 1]} : vector<16x32xbf16> to vector<8x8xbf16>
    %cst_25 = arith.constant dense<0.000000e+00> : vector<8x8xf32>
    %72 = tpu.matmul %70, %71, %cst_25 {dimension_numbers = #tpu.dot_dimension_numbers<[1], [1], [0], [0], [0, 0, 1, 0], [], []>} : vector<8x8xbf16>, vector<8x8xbf16>, vector<8x8xf32> -> vector<8x8xf32>
    %73 = vector.extract_strided_slice %47 {offsets = [8, 24], sizes = [8, 8], strides = [1, 1]} : vector<16x32xbf16> to vector<8x8xbf16>
    %74 = vector.extract_strided_slice %49 {offsets = [8, 24], sizes = [8, 8], strides = [1, 1]} : vector<16x32xbf16> to vector<8x8xbf16>
    %cst_26 = arith.constant dense<0.000000e+00> : vector<8x8xf32>
    %75 = tpu.matmul %73, %74, %cst_26 {dimension_numbers = #tpu.dot_dimension_numbers<[1], [1], [0], [0], [0, 0, 1, 0], [], []>} : vector<8x8xbf16>, vector<8x8xbf16>, vector<8x8xf32> -> vector<8x8xf32>
    %76 = tpu.concatenate %54, %57, %60, %63, %66, %69, %72, %75 in 0 : vector<8x8xf32>, vector<8x8xf32>, vector<8x8xf32>, vector<8x8xf32>, vector<8x8xf32>, vector<8x8xf32>, vector<8x8xf32>, vector<8x8xf32> -> vector<64x8xf32>
    %cst_27 = arith.constant dense<0xFF800000> : vector<64xf32>
    %77 = vector.multi_reduction <maximumf>, %76, %cst_27 [1] : vector<64x8xf32> to vector<64xf32>
    %78 = vector.shape_cast %77 : vector<64xf32> to vector<64x1xf32>
    %79 = vector.broadcast %78 : vector<64x1xf32> to vector<64x8xf32>
    %80 = arith.subf %76, %79 : vector<64x8xf32>
    %81 = math.exp %80 : vector<64x8xf32>
    %cst_28 = arith.constant dense<0.000000e+00> : vector<64xf32>
    %82 = vector.multi_reduction <add>, %81, %cst_28 [1] : vector<64x8xf32> to vector<64xf32>
    %83 = vector.shape_cast %82 : vector<64xf32> to vector<64x1xf32>
    %84 = vector.broadcast %83 : vector<64x1xf32> to vector<64x8xf32>
    %85 = arith.divf %81, %84 : vector<64x8xf32>
    %86 = arith.truncf %85 : vector<64x8xf32> to vector<64x8xbf16>
    %87 = vector.extract_strided_slice %86 {offsets = [0, 0], sizes = [8, 8], strides = [1, 1]} : vector<64x8xbf16> to vector<8x8xbf16>
    %88 = vector.extract_strided_slice %51 {offsets = [0, 0], sizes = [8, 8], strides = [1, 1]} : vector<16x32xbf16> to vector<8x8xbf16>
    %cst_29 = arith.constant dense<0.000000e+00> : vector<8x8xf32>
    %89 = tpu.matmul %87, %88, %cst_29 {dimension_numbers = #tpu.dot_dimension_numbers<[1], [0], [0], [1], [0, 0, 1, 1], [], []>} : vector<8x8xbf16>, vector<8x8xbf16>, vector<8x8xf32> -> vector<8x8xf32>
    %90 = vector.extract_strided_slice %86 {offsets = [8, 0], sizes = [8, 8], strides = [1, 1]} : vector<64x8xbf16> to vector<8x8xbf16>
    %91 = vector.extract_strided_slice %51 {offsets = [0, 8], sizes = [8, 8], strides = [1, 1]} : vector<16x32xbf16> to vector<8x8xbf16>
    %cst_30 = arith.constant dense<0.000000e+00> : vector<8x8xf32>
    %92 = tpu.matmul %90, %91, %cst_30 {dimension_numbers = #tpu.dot_dimension_numbers<[1], [0], [0], [1], [0, 0, 1, 1], [], []>} : vector<8x8xbf16>, vector<8x8xbf16>, vector<8x8xf32> -> vector<8x8xf32>
    %93 = vector.extract_strided_slice %86 {offsets = [16, 0], sizes = [8, 8], strides = [1, 1]} : vector<64x8xbf16> to vector<8x8xbf16>
    %94 = vector.extract_strided_slice %51 {offsets = [0, 16], sizes = [8, 8], strides = [1, 1]} : vector<16x32xbf16> to vector<8x8xbf16>
    %cst_31 = arith.constant dense<0.000000e+00> : vector<8x8xf32>
    %95 = tpu.matmul %93, %94, %cst_31 {dimension_numbers = #tpu.dot_dimension_numbers<[1], [0], [0], [1], [0, 0, 1, 1], [], []>} : vector<8x8xbf16>, vector<8x8xbf16>, vector<8x8xf32> -> vector<8x8xf32>
    %96 = vector.extract_strided_slice %86 {offsets = [24, 0], sizes = [8, 8], strides = [1, 1]} : vector<64x8xbf16> to vector<8x8xbf16>
    %97 = vector.extract_strided_slice %51 {offsets = [0, 24], sizes = [8, 8], strides = [1, 1]} : vector<16x32xbf16> to vector<8x8xbf16>
    %cst_32 = arith.constant dense<0.000000e+00> : vector<8x8xf32>
    %98 = tpu.matmul %96, %97, %cst_32 {dimension_numbers = #tpu.dot_dimension_numbers<[1], [0], [0], [1], [0, 0, 1, 1], [], []>} : vector<8x8xbf16>, vector<8x8xbf16>, vector<8x8xf32> -> vector<8x8xf32>
    %99 = tpu.concatenate %89, %92, %95, %98 in 1 : vector<8x8xf32>, vector<8x8xf32>, vector<8x8xf32>, vector<8x8xf32> -> vector<8x32xf32>
    %100 = vector.extract_strided_slice %86 {offsets = [32, 0], sizes = [8, 8], strides = [1, 1]} : vector<64x8xbf16> to vector<8x8xbf16>
    %101 = vector.extract_strided_slice %51 {offsets = [8, 0], sizes = [8, 8], strides = [1, 1]} : vector<16x32xbf16> to vector<8x8xbf16>
    %cst_33 = arith.constant dense<0.000000e+00> : vector<8x8xf32>
    %102 = tpu.matmul %100, %101, %cst_33 {dimension_numbers = #tpu.dot_dimension_numbers<[1], [0], [0], [1], [0, 0, 1, 1], [], []>} : vector<8x8xbf16>, vector<8x8xbf16>, vector<8x8xf32> -> vector<8x8xf32>
    %103 = vector.extract_strided_slice %86 {offsets = [40, 0], sizes = [8, 8], strides = [1, 1]} : vector<64x8xbf16> to vector<8x8xbf16>
    %104 = vector.extract_strided_slice %51 {offsets = [8, 8], sizes = [8, 8], strides = [1, 1]} : vector<16x32xbf16> to vector<8x8xbf16>
    %cst_34 = arith.constant dense<0.000000e+00> : vector<8x8xf32>
    %105 = tpu.matmul %103, %104, %cst_34 {dimension_numbers = #tpu.dot_dimension_numbers<[1], [0], [0], [1], [0, 0, 1, 1], [], []>} : vector<8x8xbf16>, vector<8x8xbf16>, vector<8x8xf32> -> vector<8x8xf32>
    %106 = vector.extract_strided_slice %86 {offsets = [48, 0], sizes = [8, 8], strides = [1, 1]} : vector<64x8xbf16> to vector<8x8xbf16>
    %107 = vector.extract_strided_slice %51 {offsets = [8, 16], sizes = [8, 8], strides = [1, 1]} : vector<16x32xbf16> to vector<8x8xbf16>
    %cst_35 = arith.constant dense<0.000000e+00> : vector<8x8xf32>
    %108 = tpu.matmul %106, %107, %cst_35 {dimension_numbers = #tpu.dot_dimension_numbers<[1], [0], [0], [1], [0, 0, 1, 1], [], []>} : vector<8x8xbf16>, vector<8x8xbf16>, vector<8x8xf32> -> vector<8x8xf32>
    %109 = vector.extract_strided_slice %86 {offsets = [56, 0], sizes = [8, 8], strides = [1, 1]} : vector<64x8xbf16> to vector<8x8xbf16>
    %110 = vector.extract_strided_slice %51 {offsets = [8, 24], sizes = [8, 8], strides = [1, 1]} : vector<16x32xbf16> to vector<8x8xbf16>
    %cst_36 = arith.constant dense<0.000000e+00> : vector<8x8xf32>
    %111 = tpu.matmul %109, %110, %cst_36 {dimension_numbers = #tpu.dot_dimension_numbers<[1], [0], [0], [1], [0, 0, 1, 1], [], []>} : vector<8x8xbf16>, vector<8x8xbf16>, vector<8x8xf32> -> vector<8x8xf32>
    %112 = tpu.concatenate %102, %105, %108, %111 in 1 : vector<8x8xf32>, vector<8x8xf32>, vector<8x8xf32>, vector<8x8xf32> -> vector<8x32xf32>
    %113 = tpu.concatenate %99, %112 in 0 : vector<8x32xf32>, vector<8x32xf32> -> vector<16x32xf32>
    %114 = arith.truncf %113 : vector<16x32xf32> to vector<16x32xbf16>
    %cst_37 = arith.constant dense<0.000000e+00> : vector<16x32xf32>
    %115 = tpu.matmul %114, %8, %cst_37 {dimension_numbers = #tpu.dot_dimension_numbers<[1], [0], [0], [1], [0, 0, 1, 1], [], []>} : vector<16x32xbf16>, vector<32x32xbf16>, vector<16x32xf32> -> vector<16x32xf32>
    %116 = vector.broadcast %16 : vector<1x32xf32> to vector<16x32xf32>
    %117 = arith.addf %115, %116 : vector<16x32xf32>
    %118 = arith.addf %0, %117 : vector<16x32xf32>
    %cst_38 = arith.constant dense<0.000000e+00> : vector<16xf32>
    %119 = vector.multi_reduction <add>, %118, %cst_38 [1] : vector<16x32xf32> to vector<16xf32>
    %120 = vector.shape_cast %119 : vector<16xf32> to vector<16x1xf32>
    %cst_39 = arith.constant 3.200000e+01 : f32
    %121 = vector.broadcast %cst_39 : f32 to vector<16x1xf32>
    %122 = arith.divf %120, %121 : vector<16x1xf32>
    %123 = vector.broadcast %122 : vector<16x1xf32> to vector<16x32xf32>
    %124 = arith.subf %118, %123 : vector<16x32xf32>
    %125 = arith.mulf %124, %124 : vector<16x32xf32>
    %cst_40 = arith.constant dense<0.000000e+00> : vector<16xf32>
    %126 = vector.multi_reduction <add>, %125, %cst_40 [1] : vector<16x32xf32> to vector<16xf32>
    %127 = vector.shape_cast %126 : vector<16xf32> to vector<16x1xf32>
    %cst_41 = arith.constant 3.200000e+01 : f32
    %128 = vector.broadcast %cst_41 : f32 to vector<16x1xf32>
    %129 = arith.divf %127, %128 : vector<16x1xf32>
    %130 = vector.broadcast %122 : vector<16x1xf32> to vector<16x32xf32>
    %131 = arith.subf %118, %130 : vector<16x32xf32>
    %cst_42 = arith.constant 9.99999974E-6 : f32
    %132 = vector.broadcast %cst_42 : f32 to vector<16x1xf32>
    %133 = arith.addf %129, %132 : vector<16x1xf32>
    %134 = math.rsqrt %133 : vector<16x1xf32>
    %135 = vector.broadcast %134 : vector<16x1xf32> to vector<16x32xf32>
    %136 = arith.mulf %131, %135 : vector<16x32xf32>
    %137 = vector.broadcast %14 : vector<1x32xf32> to vector<16x32xf32>
    %138 = arith.mulf %136, %137 : vector<16x32xf32>
    %139 = vector.broadcast %15 : vector<1x32xf32> to vector<16x32xf32>
    %140 = arith.addf %138, %139 : vector<16x32xf32>
    %141 = arith.truncf %140 : vector<16x32xf32> to vector<16x32xbf16>
    %cst_43 = arith.constant dense<0.000000e+00> : vector<16x128xf32>
    %142 = tpu.matmul %141, %5, %cst_43 {dimension_numbers = #tpu.dot_dimension_numbers<[1], [0], [0], [1], [0, 0, 1, 1], [], []>} : vector<16x32xbf16>, vector<32x128xbf16>, vector<16x128xf32> -> vector<16x128xf32>
    %143 = vector.broadcast %6 : vector<1x128xf32> to vector<16x128xf32>
    %144 = arith.addf %142, %143 : vector<16x128xf32>
    %cst_44 = arith.constant 5.000000e-01 : f32
    %145 = vector.broadcast %cst_44 : f32 to vector<16x128xf32>
    %146 = arith.mulf %145, %144 : vector<16x128xf32>
    %cst_45 = arith.constant 0.707106769 : f32
    %147 = vector.broadcast %cst_45 : f32 to vector<16x128xf32>
    %148 = arith.mulf %144, %147 : vector<16x128xf32>
    %149 = math.erf %148 : vector<16x128xf32>
    %cst_46 = arith.constant 1.000000e+00 : f32
    %150 = vector.broadcast %cst_46 : f32 to vector<16x128xf32>
    %151 = arith.addf %150, %149 : vector<16x128xf32>
    %152 = arith.mulf %146, %151 : vector<16x128xf32>
    %153 = arith.truncf %152 : vector<16x128xf32> to vector<16x128xbf16>
    %cst_47 = arith.constant dense<0.000000e+00> : vector<16x32xf32>
    %154 = tpu.matmul %153, %10, %cst_47 {dimension_numbers = #tpu.dot_dimension_numbers<[1], [0], [0], [1], [0, 0, 1, 1], [], []>} : vector<16x128xbf16>, vector<128x32xbf16>, vector<16x32xf32> -> vector<16x32xf32>
    %155 = vector.broadcast %17 : vector<1x32xf32> to vector<16x32xf32>
    %156 = arith.addf %154, %155 : vector<16x32xf32>
    %157 = arith.addf %118, %156 : vector<16x32xf32>
    %c0_48 = arith.constant 0 : index
    %c0_49 = arith.constant 0 : index
    %158 = vector.load %arg4[%c0_48, %c0_49] : memref<16x32xf32, #tpu.memory_space<vmem>>, vector<16x32xf32>
    tpu.vector_store %arg4[%c0_48, %c0_49], %157 {strides = array<i32>} : memref<16x32xf32, #tpu.memory_space<vmem>>, vector<16x32xf32>,
    return
  }
}

</mosaic_0001>

<bundles_post_ra>
// kernel: transformer_encoder_block.1
= control target key start
LH: loop header
LB: loop body
LE: loop exit
PB: predicated region body
PF: predicated region fallthrough
CT: control target
= control target key end

     0   :  { %vm66_vm0 = vcmask 261120   ;;  %s1464_s0 = inlined_call_operand.vmem [shape: f32[16,32], index: 0, kind: input, shape index: {}]   ;;  %s1465_s1 = inlined_call_operand.vmem [shape: f32[33,96], index: 1, kind: input, shape index: {}]   ;;  %s1466_s2 = inlined_call_operand.vmem [shape: f32[33,128], index: 2, kind: input, shape index: {}]   ;;  %s1467_s3 = inlined_call_operand.vmem [shape: f32[166,32], index: 3, kind: input, shape index: {}]   ;;  %s1468_s4 = inlined_call_operand.hbm [shape: f32[16,32], index: 4, kind: output, shape index: {}]  }
   0x1   :  { %v1132_v0 = vld [vmem:[%s1464_s0] sm:$0xff] }
   0x2   :  { %v67_v1 = vsel %vm66_vm0, %v1132_v0, 0.0 }
   0x3   :  { %9 = vsyncpa [#allocation3], 0  ;;  %68 = vadd.xlane.f32.xlu0 %v67_v1  ;;  %v1139_v2 = vld [vmem:[%s1464_s0 + $0x8] sm:$0xff]  ;;  %v1087_v4 = vmov 32.0   ;;  %v23_v21 = vld [vmem:[%s1465_s1 + $0x10] sm:$0xff]  ;;  %s1088_s30 = smov 88  }
   0x4   :  { %v70_v3 = vsel %vm66_vm0, %v1139_v2, 0.0  ;;  %1014 = vrcp.f32 %v1087_v4  ;;  %v24_v22 = vld [vmem:[%s1465_s1 + $0x18] sm:$0xff]  ;;  %v21_v24 = vld [vmem:[%s1465_s1] sm:$0xff]  ;;  %v22_v25 = vld [vmem:[%s1465_s1 + $0x8] sm:$0xff]  ;;  %s1089_s5 = smov 112   ;;  %s1091_s6 = smov 80  }
   0x5   :  { %v26_v23 = vpack.c.bf16 %v24_v22, %v23_v21  ;;  %v25_v27 = vpack.c.bf16 %v22_v25, %v21_v24  ;;  %v1168_v44 = vld [vmem:[%s1467_s3 + $0xa0] sm:$0x3f]  ;;  %s1092_s7 = smov 104   ;;  %s1093_s8 = smov 72   ;;  %vm154_vm8 = vcmask 64512   ;;  %vm547_vm9 = vcmask 1043456  }
   0x6   :  { %v118_v47 = vperm.slane %v1168_v44, 0  ;;  %v121_v52 = vperm.slane %v1168_v44, 1  ;;  %v1012_v57 = vld [vmem:[%s1465_s1 + $0x20] ss:$0 sm:$0xff]  ;;  %s1090_s1 = smov 120   ;;  %s1094_s9 = smov 96  }
   0x7   :  { %135 = vmatpush.bf16.msra.mxu0 %v26_v23  ;;  %s1095_s10 = smov 48   ;;  %s1096_s11 = smov 56  }
   0x8   :  { %s1097_s12 = smov 40   ;;  %s1098_s13 = smov 64  }
   0x9   :  { %s1099_s14 = smov 8   ;;  %s1100_s15 = smov 16  }
   0xa   :  { %v1015_v5 = vpop.eup %1014  ;;  %s1101_s16 = smov 24   ;;  %s947_s17 = sshll.u32 %s1468_s4, 4  ;;  %s948_s17 = int_to_ptr.hbm [resolvable:$true] %s947_s17 }
   0xb   :  { %71 = vadd.xlane.f32.xlu0 %v70_v3  ;;  %v74_v6 = vmul.f32 32.0, %v1015_v5  ;;  %vm78_vm1 = vweird.f32 %v1015_v5  ;;  %136 = vmatpush.bf16.msra.mxu0 %v25_v27 }
   0xd   :  { %v75_v7 = vsub.f32 1.0, %v74_v6 }
   0xf   :  { %v76_v8 = vmul.f32 %v1015_v5, %v75_v7 }
  0x11   :  { %v77_v9 = vadd.f32 %v1015_v5, %v76_v8 }
  0x13   :  { %v1143_v10 = vsel %vm78_vm1, %v1015_v5, %v77_v9 }
  0x76   :  { %v69_v11 = vpop.xlane.xlu0 %68 }
  0x77   :  { %v80_v12 = vmul.f32 %v1143_v10, %v69_v11 }
  0x79   :  { %v82_v13 = vsub.f32 %v1132_v0, %v80_v12 }
  0x7b   :  { %v84_v14 = vmul.f32 %v82_v13, %v82_v13 }
  0x7d   :  { %v86_v15 = vsel %vm66_vm0, %v84_v14, 0.0 }
  0x7e   :  { %87 = vadd.xlane.f32.xlu1 %v86_v15  ;;  %v72_v16 = vpop.xlane.xlu0 %71 }
  0x7f   :  { %v81_v17 = vmul.f32 %v1143_v10, %v72_v16 }
  0x81   :  { %v83_v18 = vsub.f32 %v1139_v2, %v81_v17 }
  0x83   :  { %v85_v19 = vmul.f32 %v83_v18, %v83_v18 }
  0x85   :  { %v89_v20 = vsel %vm66_vm0, %v85_v19, 0.0 }
  0x86   :  { %90 = vadd.xlane.f32.xlu1 %v89_v20 }
  0xf1   :  { %v88_v26 = vpop.xlane.xlu1 %87 }
  0xf2   :  { %v92_v28 = vmul.f32 %v88_v26, %v1143_v10 }
  0xf4   :  { %v94_v29 = vadd.f32 1e-05, %v92_v28 }
  0xf6   :  { %1016 = vrsqrt.f32 %v94_v29  ;;  %vm102_vm3 = vweird.f32 %v94_v29 }
  0xf9   :  { %v91_v30 = vpop.xlane.xlu1 %90 }
  0xfa   :  { %v93_v31 = vmul.f32 %v91_v30, %v1143_v10 }
  0xfc   :  { %v1017_v32 = vpop.eup %1016  ;;  %v95_v33 = vadd.f32 1e-05, %v93_v31 }
  0xfd   :  { %v97_v34 = vmul.f32 %v1017_v32, %v94_v29  ;;  %vm103_vm2 = vweird.f32 %v1017_v32 }
  0xfe   :  { %1018 = vrsqrt.f32 %v95_v33  ;;  %vm104_vm4 = vmor %vm102_vm3, %vm103_vm2  ;;  %vm112_vm6 = vweird.f32 %v95_v33 }
  0xff   :  { %v98_v35 = vmul.f32 %v1017_v32, %v97_v34 }
 0x101   :  { %v99_v36 = vmul.f32 0.5, %v98_v35 }
 0x103   :  { %v100_v37 = vsub.f32 1.5, %v99_v36 }
 0x104   :  { %v1019_v38 = vpop.eup %1018 }
 0x105   :  { %v101_v39 = vmul.f32 %v1017_v32, %v100_v37  ;;  %v107_v40 = vmul.f32 %v1019_v38, %v95_v33  ;;  %vm113_vm5 = vweird.f32 %v1019_v38 }
 0x106   :  { %vm114_vm7 = vmor %vm112_vm6, %vm113_vm5 }
 0x107   :  { %v108_v41 = vmul.f32 %v1019_v38, %v107_v40  ;;  %v105_v42 = vsel %vm104_vm4, %v1017_v32, %v101_v39 }
 0x108   :  { %v116_v46 = vmul.f32 %v105_v42, %v82_v13 }
 0x109   :  { %v109_v43 = vmul.f32 0.5, %v108_v41 }
 0x10a   :  { %v119_v51 = vmul.f32 %v118_v47, %v116_v46 }
 0x10b   :  { %v110_v45 = vsub.f32 1.5, %v109_v43 }
 0x10c   :  { %v122_v54 = vadd.f32 %v121_v52, %v119_v51 }
 0x10d   :  { %v111_v48 = vmul.f32 %v1019_v38, %v110_v45 }
 0x10f   :  { %v115_v49 = vsel %vm114_vm7, %v1019_v38, %v111_v48 }
 0x110   :  { %v117_v50 = vmul.f32 %v115_v49, %v83_v18 }
 0x112   :  { %v120_v53 = vmul.f32 %v118_v47, %v117_v50 }
 0x114   :  { %v123_v55 = vadd.f32 %v121_v52, %v120_v53 }
 0x116   :  { %v124_v56 = vpack.c.bf16 %v123_v55, %v122_v54 }
 0x118   :  { %959 = vmatmul.msk.bf16.vlgmr.msra.gmra.mxu0 %vm66_vm0, %v124_v56 }
 0x195   :  { %v138_v58 = vpop.f32.mrf.mxu0 }
 0x196   :  { %v139_v59 = vadd.f32 %v1012_v57, %v138_v58 }
 0x198   :  { %v143_v60 = vmul.f32 0.35355338, %v139_v59  ;;  %v147_v61 = vpack.c.bf16 %v139_v59, %v139_v59 }
 0x19a   :  { %v1176_v62 = vpack.c.bf16 %v143_v60, %v143_v60  ;;  %v150_v63 = vunpack.c.l.b16 %v147_v61 }
 0x19c   :  { %v1178_v1 = vpack.c.b16 %v150_v63, %v150_v63  ;;  %v175_v3 = vunpack.c.l.b16 %v1176_v62 }
 0x19d   :  { %v140_v4 = vpop.f32.mrf.mxu0 }
 0x19e   :  { %v141_v5 = vadd.f32 %v1012_v57, %v140_v4  ;;  %179 = vrot.lane.b32.xlu2 %v1178_v1, %s1088_s30  ;;  %v176_v6 = vpack.c.b16 %v175_v3, %v175_v3 }
 0x1a0   :  { %v144_v7 = vmul.f32 0.35355338, %v141_v5  ;;  %200 = vrot.lane.b32.xlu1 %v176_v6, %s1089_s5  ;;  %177 = vrot.lane.b32.xlu0 %v176_v6, %s1090_s1  ;;  %v148_v11 = vpack.c.bf16 %v141_v5, %v141_v5 }
 0x1a2   :  { %v146_v8 = vpack.c.bf16 %v144_v7, %v144_v7  ;;  %v247_v13 = vunpack.c.l.b16 %v148_v11 }
 0x1a4   :  { %v271_v9 = vunpack.c.l.b16 %v146_v8  ;;  %v1183_v14 = vpack.c.b16 %v247_v13, %v247_v13 }
 0x1a6   :  { %202 = vrot.lane.b32.xlu2 %v1178_v1, %s1091_s6  ;;  %v272_v12 = vpack.c.b16 %v271_v9, %v271_v9 }
 0x1a8   :  { %296 = vrot.lane.b32.xlu1 %v272_v12, %s1089_s5  ;;  %223 = vrot.lane.b32.xlu0 %v176_v6, %s1092_s7 }
 0x1ae   :  { %225 = vrot.lane.b32.xlu2 %v1178_v1, %s1093_s8 }
 0x1b0   :  { %152 = vrot.lane.b32.xlu1 %v1178_v1, %s1094_s9  ;;  %321 = vrot.lane.b32.xlu0 %v1183_v14, %s1093_s8 }
 0x1b6   :  { %275 = vrot.lane.b32.xlu2 %v1183_v14, %s1088_s30 }
 0x1b8   :  { %249 = vrot.lane.b32.xlu0 %v1183_v14, %s1094_s9 }
 0x1be   :  { %298 = vrot.lane.b32.xlu2 %v1183_v14, %s1091_s6 }
 0x1c6   :  { %273 = vrot.lane.b32.xlu2 %v272_v12, %s1090_s1 }
 0x1ce   :  { %319 = vrot.lane.b32.xlu2 %v272_v12, %s1092_s7 }
 0x1f8   :  { %v180_v15 = vpop.permute.xlu2 %179 }
 0x1f9   :  { %v185_v16 = vsel %vm154_vm8, %v180_v15, 0 }
 0x1fa   :  { %194 = vmatpush.bf16.xpose.msra.mxu2 %v185_v16 }
 0x200   :  { %v203_v17 = vpop.permute.xlu2 %202 }
 0x201   :  { %v208_v18 = vsel %vm154_vm8, %v203_v17, 0 }
 0x202   :  { %217 = vmatpush.bf16.xpose.msra.mxu3 %v208_v18 }
 0x208   :  { %v226_v19 = vpop.permute.xlu2 %225 }
 0x209   :  { %v231_v20 = vsel %vm154_vm8, %v226_v19, 0 }
 0x20a   :  { %240 = vmatpush.bf16.xpose.msrb.mxu0 %v231_v20 }
 0x210   :  { %v276_v21 = vpop.permute.xlu2 %275 }
 0x211   :  { %v281_v22 = vsel %vm154_vm8, %v276_v21, 0 }
 0x212   :  { %290 = vmatpush.bf16.xpose.msrb.mxu2 %v281_v22  ;;  %v201_v23 = vpop.permute.xlu1 %200  ;;  %v178_v24 = vpop.permute.xlu0 %177 }
 0x213   :  { %961 = vmatmul.msk.bf16.vlgmr.msra.gmra.mxu2 %vm154_vm8, %v178_v24  ;;  %962 = vmatmul.msk.bf16.vlgmr.msra.gmra.mxu3 %vm154_vm8, %v201_v23 }
 0x218   :  { %v299_v25 = vpop.permute.xlu2 %298 }
 0x219   :  { %v304_v26 = vsel %vm154_vm8, %v299_v25, 0 }
 0x21a   :  { %313 = vmatpush.bf16.xpose.msrb.mxu3 %v304_v26  ;;  %v297_v27 = vpop.permute.xlu1 %296  ;;  %v224_v28 = vpop.permute.xlu0 %223 }
 0x21b   :  { %963 = vmatmul.msk.bf16.vlgmr.msrb.gmra.mxu0 %vm154_vm8, %v224_v28 }
 0x220   :  { %v274_v29 = vpop.permute.xlu2 %273 }
 0x222   :  { %v153_v30 = vpop.permute.xlu1 %152  ;;  %v322_v31 = vpop.permute.xlu0 %321 }
 0x223   :  { %v327_v32 = vsel %vm154_vm8, %v322_v31, 0  ;;  %965 = vmatmul.msk.bf16.vlgmr.msrb.gmra.mxu2 %vm154_vm8, %v274_v29  ;;  %966 = vmatmul.msk.bf16.vlgmr.msrb.gmra.mxu3 %vm154_vm8, %v297_v27  ;;  %v159_v33 = vsel %vm154_vm8, %v153_v30, 0 }
 0x224   :  { %168 = vmatpush.bf16.xpose.msra.mxu1 %v159_v33  ;;  %336 = vmatpush.bf16.xpose.msra.mxu0 %v327_v32 }
 0x228   :  { %v320_v34 = vpop.permute.xlu2 %319 }
 0x22a   :  { %v250_v35 = vpop.permute.xlu0 %249 }
 0x22b   :  { %960 = vmatmul.msk.bf16.vlgmr.msra.gmra.mxu1 %vm154_vm8, %v1176_v62  ;;  %967 = vmatmul.msk.bf16.vlgmr.msra.gmra.mxu0 %vm154_vm8, %v320_v34  ;;  %v255_v36 = vsel %vm154_vm8, %v250_v35, 0 }
 0x22c   :  { %264 = vmatpush.bf16.xpose.msrb.mxu1 %v255_v36 }
 0x23b   :  { %964 = vmatmul.msk.bf16.vlgmr.msrb.gmra.mxu1 %vm154_vm8, %v146_v8 }
 0x296   :  { %v196_v37 = vpop.f32.mrf.mxu2  ;;  %v219_v38 = vpop.f32.mrf.mxu3 }
 0x297   :  { %v348_v39 = vsel %vm154_vm8, %v219_v38, -inf  ;;  %v345_v40 = vsel %vm154_vm8, %v196_v37, -inf }
 0x298   :  { %349 = vmax.xlane.f32.xlu1 %v348_v39  ;;  %346 = vmax.xlane.f32.xlu2 %v345_v40  ;;  %v242_v41 = vpop.f32.mrf.mxu0 }
 0x299   :  { %v351_v42 = vsel %vm154_vm8, %v242_v41, -inf }
 0x29a   :  { %352 = vmax.xlane.f32.xlu0 %v351_v42 }
 0x29e   :  { %v198_v43 = vpop.f32.mrf.mxu2  ;;  %v221_v45 = vpop.f32.mrf.mxu3 }
 0x2a0   :  { %v244_v46 = vpop.f32.mrf.mxu0 }
 0x2a6   :  { %v292_v47 = vpop.f32.mrf.mxu2  ;;  %v1211_v48 = vpop.f32.mrf.mxu3 }
 0x2a7   :  { %v357_v57 = vsel %vm154_vm8, %v292_v47, -inf  ;;  %v360_v61 = vsel %vm154_vm8, %v1211_v48, -inf }
 0x2a8   :  { %v1213_v49 = vpop.f32.mrf.mxu1  ;;  %v338_v50 = vpop.f32.mrf.mxu0 }
 0x2a9   :  { %v342_v51 = vsel %vm154_vm8, %v1213_v49, -inf  ;;  %v363_v52 = vsel %vm154_vm8, %v338_v50, -inf }
 0x2aa   :  { %343 = vmax.xlane.f32.xlu2 %v342_v51  ;;  %364 = vmax.xlane.f32.xlu0 %v363_v52 }
 0x2ae   :  { %v294_v53 = vpop.f32.mrf.mxu2  ;;  %v317_v54 = vpop.f32.mrf.mxu3 }
 0x2b0   :  { %v172_v55 = vpop.f32.mrf.mxu1  ;;  %v340_v56 = vpop.f32.mrf.mxu0 }
 0x2b2   :  { %358 = vmax.xlane.f32.xlu2 %v357_v57 }
 0x2b8   :  { %v1219_v58 = vpop.f32.mrf.mxu1 }
 0x2b9   :  { %v354_v59 = vsel %vm154_vm8, %v1219_v58, -inf }
 0x2ba   :  { %355 = vmax.xlane.f32.xlu1 %v354_v59 }
 0x2be   :  { %585 = vrot.lane.b32.xlu0 %v1178_v1, %s1095_s10 }
 0x2c0   :  { %v268_v60 = vpop.f32.mrf.mxu1 }
 0x2c2   :  { %361 = vmax.xlane.f32.xlu1 %v360_v61 }
 0x2db   :  { %564 = vrot.lane.b32.xlu1 %v1178_v1, %s1096_s11 }
 0x30b   :  { %v350_v62 = vpop.xlane.xlu1 %349  ;;  %v347_v63 = vpop.xlane.xlu2 %346 }
 0x30c   :  { %v368_v3 = vsub.f32 %v219_v38, %v350_v62  ;;  %v367_v4 = vsub.f32 %v196_v37, %v347_v63 }
 0x30d   :  { %v353_v5 = vpop.xlane.xlu0 %352 }
 0x30e   :  { %v378_v6 = vmul.f32 1.442695, %v368_v3  ;;  %v376_v7 = vmul.f32 1.442695, %v367_v4  ;;  %v369_v8 = vsub.f32 %v242_v41, %v353_v5 }
 0x310   :  { %1020 = vpow2.f32 %v378_v6  ;;  %v380_v9 = vmul.f32 1.442695, %v369_v8 }
 0x311   :  { %1022 = vpow2.f32 %v376_v7 }
 0x312   :  { %1024 = vpow2.f32 %v380_v9 }
 0x316   :  { %v1229_v11 = vpop.eup %1020 }
 0x317   :  { %v1231_v12 = vpop.eup %1022  ;;  %v396_v13 = vsel %vm154_vm8, %v1229_v11, 0.0 }
 0x318   :  { %v1235_v15 = vpop.eup %1024  ;;  %397 = vadd.xlane.f32.xlu0 %v396_v13  ;;  %v393_v16 = vsel %vm154_vm8, %v1231_v12, 0.0 }
 0x319   :  { %394 = vadd.xlane.f32.xlu1 %v393_v16  ;;  %v399_v17 = vsel %vm154_vm8, %v1235_v15, 0.0 }
 0x31a   :  { %400 = vadd.xlane.f32.xlu2 %v399_v17 }
 0x31d   :  { %v344_v18 = vpop.xlane.xlu2 %343  ;;  %v365_v19 = vpop.xlane.xlu0 %364 }
 0x31e   :  { %v373_v20 = vsub.f32 %v338_v50, %v365_v19  ;;  %v366_v37 = vsub.f32 %v1213_v49, %v344_v18 }
 0x320   :  { %v388_v21 = vmul.f32 1.442695, %v373_v20  ;;  %v374_v39 = vmul.f32 1.442695, %v366_v37 }
 0x322   :  { %1026 = vpow2.f32 %v388_v21 }
 0x325   :  { %v359_v22 = vpop.xlane.xlu2 %358 }
 0x326   :  { %v371_v23 = vsub.f32 %v292_v47, %v359_v22 }
 0x328   :  { %v384_v24 = vmul.f32 1.442695, %v371_v23  ;;  %v1241_v25 = vpop.eup %1026 }
 0x329   :  { %v411_v26 = vsel %vm154_vm8, %v1241_v25, 0.0 }
 0x32a   :  { %1028 = vpow2.f32 %v384_v24  ;;  %412 = vadd.xlane.f32.xlu2 %v411_v26 }
 0x32d   :  { %v356_v27 = vpop.xlane.xlu1 %355 }
 0x32e   :  { %v370_v43 = vsub.f32 %v1219_v58, %v356_v27 }
 0x330   :  { %v1245_v28 = vpop.eup %1028  ;;  %v586_v29 = vpop.permute.xlu0 %585  ;;  %v382_v45 = vmul.f32 1.442695, %v370_v43 }
 0x331   :  { %v591_v30 = vsel %vm547_vm9, %v586_v29, 0  ;;  %v405_v31 = vsel %vm154_vm8, %v1245_v28, 0.0 }
 0x332   :  { %686 = vrot.lane.b32.xlu1 %v1183_v14, %s1095_s10  ;;  %406 = vadd.xlane.f32.xlu0 %v405_v31 }
 0x333   :  { %600 = vmatpush.bf16.msra.mxu3 %v591_v30 }
 0x335   :  { %v362_v32 = vpop.xlane.xlu1 %361 }
 0x336   :  { %v372_v33 = vsub.f32 %v1211_v48, %v362_v32 }
 0x338   :  { %v386_v34 = vmul.f32 1.442695, %v372_v33 }
 0x33a   :  { %1030 = vpow2.f32 %v386_v34 }
 0x33b   :  { %1032 = vpow2.f32 %v374_v39 }
 0x33c   :  { %1034 = vpow2.f32 %v382_v45 }
 0x340   :  { %v1253_v35 = vpop.eup %1030 }
 0x341   :  { %v408_v36 = vsel %vm154_vm8, %v1253_v35, 0.0  ;;  %v1263_v41 = vpop.eup %1032 }
 0x342   :  { %409 = vadd.xlane.f32.xlu2 %v408_v36  ;;  %v390_v42 = vsel %vm154_vm8, %v1263_v41, 0.0  ;;  %v1270_v46 = vpop.eup %1034 }
 0x343   :  { %v402_v47 = vsel %vm154_vm8, %v1270_v46, 0.0 }
 0x346   :  { %665 = vrot.lane.b32.xlu0 %v1183_v14, %s1096_s11 }
 0x34d   :  { %v565_v38 = vpop.permute.xlu1 %564 }
 0x34e   :  { %v570_v40 = vsel %vm547_vm9, %v565_v38, 0  ;;  %707 = vrot.lane.b32.xlu0 %v1183_v14, %s1097_s12 }
 0x34f   :  { %579 = vmatpush.bf16.msra.mxu2 %v570_v40 }
 0x356   :  { %542 = vrot.lane.b32.xlu0 %v1178_v1, %s1098_s13 }
 0x35a   :  { %606 = vrot.lane.b32.xlu2 %v1178_v1, %s1097_s12 }
 0x35c   :  { %391 = vadd.xlane.f32.xlu1 %v390_v42 }
 0x35e   :  { %644 = vrot.lane.b32.xlu0 %v1183_v14, %s1098_s13 }
 0x383   :  { %403 = vadd.xlane.f32.xlu2 %v402_v47 }
 0x38b   :  { %v398_v48 = vpop.xlane.xlu0 %397 }
 0x38c   :  { %v395_v49 = vpop.xlane.xlu1 %394  ;;  %1036 = vrcp.f32 %v398_v48  ;;  %v455_v54 = vand.u32 2147483648, %v398_v48  ;;  %v453_v57 = vand.u32 2147483647, %v398_v48  ;;  %vm449_vm12 = vweird.f32 %v398_v48 }
 0x38d   :  { %1038 = vrcp.f32 %v395_v49  ;;  %v440_v55 = vand.u32 2147483648, %v395_v49  ;;  %v438_v59 = vand.u32 2147483647, %v395_v49  ;;  %vm434_vm13 = vweird.f32 %v395_v49  ;;  %v401_v63 = vpop.xlane.xlu2 %400 }
 0x38e   :  { %v456_v62 = vor.u32 1.1754944e-38, %v455_v54  ;;  %vm454_vm1 = vcmp.eq.f32.partialorder %v453_v57, 8.507059e+37  ;;  %1040 = vrcp.f32 %v401_v63  ;;  %v470_v33 = vand.u32 2147483648, %v401_v63 }
 0x38f   :  { %v441_v3 = vor.u32 1.1754944e-38, %v440_v55  ;;  %vm439_vm2 = vcmp.eq.f32.partialorder %v438_v59, 8.507059e+37  ;;  %vm464_vm6 = vweird.f32 %v401_v63  ;;  %v468_v36 = vand.u32 2147483647, %v401_v63 }
 0x390   :  { %v471_v45 = vor.u32 1.1754944e-38, %v470_v33 }
 0x392   :  { %v1037_v1 = vpop.eup %1036 }
 0x393   :  { %v1039_v50 = vpop.eup %1038  ;;  %v445_v51 = vmul.f32 %v1037_v1, %v398_v48  ;;  %vm450_vm10 = vweird.f32 %v1037_v1 }
 0x394   :  { %v430_v52 = vmul.f32 %v1039_v50, %v395_v49  ;;  %vm435_vm11 = vweird.f32 %v1039_v50  ;;  %vm451_vm14 = vmor %vm449_vm12, %vm450_vm10  ;;  %v1041_v17 = vpop.eup %1040  ;;  %vm469_vm12 = vcmp.eq.f32.partialorder %v468_v36, 8.507059e+37 }
 0x395   :  { %v446_v53 = vsub.f32 1.0, %v445_v51  ;;  %vm436_vm15 = vmor %vm434_vm13, %vm435_vm11  ;;  %v460_v21 = vmul.f32 %v1041_v17, %v401_v63  ;;  %vm465_vm4 = vweird.f32 %v1041_v17 }
 0x396   :  { %v431_v14 = vsub.f32 1.0, %v430_v52  ;;  %vm466_vm10 = vmor %vm464_vm6, %vm465_vm4 }
 0x397   :  { %v447_v56 = vmul.f32 %v1037_v1, %v446_v53  ;;  %v461_v22 = vsub.f32 1.0, %v460_v21 }
 0x398   :  { %v432_v58 = vmul.f32 %v1039_v50, %v431_v14 }
 0x399   :  { %v448_v60 = vadd.f32 %v1037_v1, %v447_v56  ;;  %v462_v24 = vmul.f32 %v1041_v17, %v461_v22 }
 0x39a   :  { %v433_v61 = vadd.f32 %v1039_v50, %v432_v58 }
 0x39b   :  { %v452_v4 = vsel %vm451_vm14, %v1037_v1, %v448_v60  ;;  %v463_v31 = vadd.f32 %v1041_v17, %v462_v24 }
 0x39c   :  { %v437_v5 = vsel %vm436_vm15, %v1039_v50, %v433_v61  ;;  %v457_v6 = vsel %vm454_vm1, %v456_v62, %v452_v4 }
 0x39d   :  { %v442_v7 = vsel %vm439_vm2, %v441_v3, %v437_v5  ;;  %v458_v8 = vmul.f32 %v1229_v11, %v457_v6  ;;  %v1279_v23 = vpop.xlane.xlu2 %412  ;;  %v467_v40 = vsel %vm466_vm10, %v1041_v17, %v463_v31 }
 0x39e   :  { %v443_v9 = vmul.f32 %v1231_v12, %v442_v7  ;;  %v472_v49 = vsel %vm469_vm12, %v471_v45, %v467_v40  ;;  %v530_v63 = vand.u32 2147483648, %v1279_v23  ;;  %vm524_vm1 = vweird.f32 %v1279_v23 }
 0x39f   :  { %v536_v16 = vpack.c.bf16 %v458_v8, %v458_v8  ;;  %v473_v53 = vmul.f32 %v1235_v15, %v472_v49  ;;  %v528_v4 = vand.u32 2147483647, %v1279_v23 }
 0x3a0   :  { %v535_v13 = vpack.c.bf16 %v443_v9, %v443_v9  ;;  %v531_v9 = vor.u32 1.1754944e-38, %v530_v63 }
 0x3a1   :  { %970 = vmatmul.msk.bf16.vlgmr.msra.gmra.mxu3 %vm154_vm8, %v536_v16  ;;  %v537_v59 = vpack.c.bf16 %v473_v53, %v473_v53 }
 0x3a2   :  { %969 = vmatmul.msk.bf16.vlgmr.msra.gmra.mxu2 %vm154_vm8, %v535_v13 }
 0x3a4   :  { %v687_v18 = vpop.permute.xlu1 %686 }
 0x3a5   :  { %v692_v19 = vsel %vm547_vm9, %v687_v18, 0  ;;  %v407_v20 = vpop.xlane.xlu0 %406 }
 0x3a6   :  { %701 = vmatpush.bf16.msrb.mxu3 %v692_v19  ;;  %1042 = vrcp.f32 %v407_v20  ;;  %v500_v27 = vand.u32 2147483648, %v407_v20  ;;  %v498_v30 = vand.u32 2147483647, %v407_v20  ;;  %vm494_vm5 = vweird.f32 %v407_v20 }
 0x3a7   :  { %1044 = vrcp.f32 %v1279_v23 }
 0x3a8   :  { %v501_v37 = vor.u32 1.1754944e-38, %v500_v27  ;;  %vm499_vm11 = vcmp.eq.f32.partialorder %v498_v30, 8.507059e+37 }
 0x3ac   :  { %v1043_v11 = vpop.eup %1042 }
 0x3ad   :  { %v490_v12 = vmul.f32 %v1043_v11, %v407_v20  ;;  %vm495_vm3 = vweird.f32 %v1043_v11  ;;  %v1282_v32 = vpop.eup %1044 }
 0x3ae   :  { %vm496_vm7 = vmor %vm494_vm5, %vm495_vm3  ;;  %v520_v42 = vmul.f32 %v1282_v32, %v1279_v23  ;;  %vm525_vm14 = vweird.f32 %v1282_v32  ;;  %vm529_vm5 = vcmp.eq.f32.partialorder %v528_v4, 8.507059e+37  ;;  %v37_v4 = vld [vmem:[%s1467_s3 + $0x10] sm:$0xff] }
 0x3af   :  { %v491_v26 = vsub.f32 1.0, %v490_v12  ;;  %vm526_vm3 = vmor %vm524_vm1, %vm525_vm14  ;;  %vm642_vm1 = vcmask 195584  }
 0x3b0   :  { %v521_v50 = vsub.f32 1.0, %v520_v42 }
 0x3b1   :  { %v492_v29 = vmul.f32 %v1043_v11, %v491_v26 }
 0x3b2   :  { %v522_v55 = vmul.f32 %v1282_v32, %v521_v50 }
 0x3b3   :  { %v493_v34 = vadd.f32 %v1043_v11, %v492_v29 }
 0x3b4   :  { %v523_v15 = vadd.f32 %v1282_v32, %v522_v55 }
 0x3b5   :  { %v497_v38 = vsel %vm496_vm7, %v1043_v11, %v493_v34  ;;  %v410_v39 = vpop.xlane.xlu2 %409 }
 0x3b6   :  { %v502_v43 = vsel %vm499_vm11, %v501_v37, %v497_v38  ;;  %1046 = vrcp.f32 %v410_v39  ;;  %v515_v57 = vand.u32 2147483648, %v410_v39  ;;  %v513_v61 = vand.u32 2147483647, %v410_v39 }
 0x3b7   :  { %v503_v47 = vmul.f32 %v1245_v28, %v502_v43  ;;  %vm509_vm15 = vweird.f32 %v410_v39  ;;  %v527_v7 = vsel %vm526_vm3, %v1282_v32, %v523_v15 }
 0x3b8   :  { %v666_v48 = vpop.permute.xlu0 %665  ;;  %v516_v5 = vor.u32 1.1754944e-38, %v515_v57  ;;  %vm514_vm4 = vcmp.eq.f32.partialorder %v513_v61, 8.507059e+37  ;;  %v532_v17 = vsel %vm529_vm5, %v531_v9, %v527_v7  ;;  %v35_v7 = vld [vmem:[%s1467_s3] sm:$0xff] }
 0x3b9   :  { %v671_v1 = vsel %vm547_vm9, %v666_v48, 0  ;;  %v539_v51 = vpack.c.bf16 %v503_v47, %v503_v47  ;;  %v533_v20 = vmul.f32 %v1241_v25, %v532_v17 }
 0x3ba   :  { %680 = vmatpush.bf16.msrb.mxu2 %v671_v1 }
 0x3bb   :  { %v541_v23 = vpack.c.bf16 %v533_v20, %v533_v20 }
 0x3bc   :  { %v1047_v52 = vpop.eup %1046 }
 0x3bd   :  { %v505_v14 = vmul.f32 %v1047_v52, %v410_v39  ;;  %v607_v54 = vpop.permute.xlu2 %606  ;;  %973 = vmatmul.msk.bf16.vlgmr.msrb.gmra.mxu2 %vm154_vm8, %v539_v51  ;;  %vm510_vm13 = vweird.f32 %v1047_v52 }
 0x3be   :  { %v612_v56 = vsel %vm547_vm9, %v607_v54, 0  ;;  %vm511_vm2 = vmor %vm509_vm15, %vm510_vm13  ;;  %vm640_vm15 = vcmask 130048  }
 0x3bf   :  { %v506_v28 = vsub.f32 1.0, %v505_v14  ;;  %621 = vmatpush.bf16.msrb.mxu0 %v612_v56 }
 0x3c0   :  { %v708_v58 = vpop.permute.xlu0 %707 }
 0x3c1   :  { %v507_v60 = vmul.f32 %v1047_v52, %v506_v28  ;;  %v713_v62 = vsel %vm547_vm9, %v708_v58, 0 }
 0x3c2   :  { %971 = vmatmul.msk.bf16.vlgmr.msrb.gmra.mxu0 %vm154_vm8, %v537_v59 }
 0x3c3   :  { %v508_v3 = vadd.f32 %v1047_v52, %v507_v60  ;;  %722 = vmatpush.bf16.msra.mxu0 %v713_v62 }
 0x3c5   :  { %v512_v6 = vsel %vm511_vm2, %v1047_v52, %v508_v3 }
 0x3c6   :  { %v517_v8 = vsel %vm514_vm4, %v516_v5, %v512_v6  ;;  %v38_v5 = vld [vmem:[%s1467_s3 + $0x18] sm:$0xff] }
 0x3c7   :  { %v518_v13 = vmul.f32 %v1253_v35, %v517_v8  ;;  %v40_v6 = vpack.c.bf16 %v38_v5, %v37_v4  ;;  %v36_v8 = vld [vmem:[%s1467_s3 + $0x8] sm:$0xff] }
 0x3c8   :  { %v543_v16 = vpop.permute.xlu0 %542  ;;  %v39_v9 = vpack.c.bf16 %v36_v8, %v35_v7 }
 0x3c9   :  { %v549_v18 = vsel %vm547_vm9, %v543_v16, 0  ;;  %v540_v19 = vpack.c.bf16 %v518_v13, %v518_v13 }
 0x3ca   :  { %558 = vmatpush.bf16.msra.mxu1 %v549_v18 }
 0x3cb   :  { %974 = vmatmul.msk.bf16.vlgmr.msrb.gmra.mxu3 %vm154_vm8, %v540_v19 }
 0x3cf   :  { %v392_v21 = vpop.xlane.xlu1 %391 }
 0x3d0   :  { %1048 = vrcp.f32 %v392_v21  ;;  %v645_v22 = vpop.permute.xlu0 %644  ;;  %v425_v26 = vand.u32 2147483648, %v392_v21  ;;  %v423_v29 = vand.u32 2147483647, %v392_v21  ;;  %vm419_vm7 = vweird.f32 %v392_v21 }
 0x3d1   :  { %v650_v11 = vsel %vm547_vm9, %v645_v22, 0 }
 0x3d2   :  { %659 = vmatpush.bf16.msrb.mxu1 %v650_v11  ;;  %975 = vmatmul.msk.bf16.vlgmr.msra.gmra.mxu0 %vm154_vm8, %v541_v23  ;;  %v426_v25 = vor.u32 1.1754944e-38, %v425_v26  ;;  %vm424_vm11 = vcmp.eq.f32.partialorder %v423_v29, 8.507059e+37 }
 0x3d6   :  { %v1049_v35 = vpop.eup %1048 }
 0x3d7   :  { %v415_v12 = vmul.f32 %v1049_v35, %v392_v21  ;;  %vm420_vm6 = vweird.f32 %v1049_v35 }
 0x3d8   :  { %vm421_vm10 = vmor %vm419_vm7, %vm420_vm6 }
 0x3d9   :  { %v416_v24 = vsub.f32 1.0, %v415_v12 }
 0x3db   :  { %v417_v27 = vmul.f32 %v1049_v35, %v416_v24 }
 0x3dd   :  { %v418_v30 = vadd.f32 %v1049_v35, %v417_v27 }
 0x3df   :  { %v422_v31 = vsel %vm421_vm10, %v1049_v35, %v418_v30  ;;  %v744_v30 = vperm.slane %v1168_v44, 4 }
 0x3e0   :  { %v427_v32 = vsel %vm424_vm11, %v426_v25, %v422_v31 }
 0x3e1   :  { %v428_v33 = vmul.f32 %v1263_v41, %v427_v32 }
 0x3e3   :  { %v534_v34 = vpack.c.bf16 %v428_v33, %v428_v33 }
 0x3e5   :  { %968 = vmatmul.msk.bf16.vlgmr.msra.gmra.mxu1 %vm154_vm8, %v534_v34 }
 0x3e6   :  { %754 = vmatpush.bf16.msra.mxu1 %v40_v6 }
 0x3ea   :  { %755 = vmatpush.bf16.msra.mxu1 %v39_v9 }
 0x3f6   :  { %v404_v36 = vpop.xlane.xlu2 %403 }
 0x3f7   :  { %1050 = vrcp.f32 %v404_v36  ;;  %v485_v40 = vand.u32 2147483648, %v404_v36  ;;  %v483_v43 = vand.u32 2147483647, %v404_v36  ;;  %vm479_vm12 = vweird.f32 %v404_v36 }
 0x3f9   :  { %v486_v47 = vor.u32 1.1754944e-38, %v485_v40  ;;  %vm484_vm14 = vcmp.eq.f32.partialorder %v483_v43, 8.507059e+37 }
 0x3fd   :  { %v1051_v37 = vpop.eup %1050 }
 0x3fe   :  { %v475_v38 = vmul.f32 %v1051_v37, %v404_v36  ;;  %vm480_vm9 = vweird.f32 %v1051_v37 }
 0x3ff   :  { %vm481_vm13 = vmor %vm479_vm12, %vm480_vm9 }
 0x400   :  { %v476_v39 = vsub.f32 1.0, %v475_v38 }
 0x402   :  { %v477_v42 = vmul.f32 %v1051_v37, %v476_v39 }
 0x404   :  { %v478_v45 = vadd.f32 %v1051_v37, %v477_v42 }
 0x406   :  { %v482_v48 = vsel %vm481_vm13, %v1051_v37, %v478_v45 }
 0x407   :  { %v487_v49 = vsel %vm484_vm14, %v486_v47, %v482_v48 }
 0x408   :  { %v488_v41 = vmul.f32 %v1270_v46, %v487_v49 }
 0x40a   :  { %v538_v1 = vpack.c.bf16 %v488_v41, %v488_v41  ;;  %v30_v41 = vld [vmem:[%s1466_s2 + $0x10] sm:$0xff] }
 0x40c   :  { %972 = vmatmul.msk.bf16.vlgmr.msrb.gmra.mxu1 %vm154_vm8, %v538_v1  ;;  %v31_v1 = vld [vmem:[%s1466_s2 + $0x18] sm:$0xff] }
 0x424   :  { %v602_v51 = vpop.f32.mrf.mxu3 }
 0x425   :  { %v581_v50 = vpop.f32.mrf.mxu2 }
 0x42c   :  { %v604_v53 = vpop.f32.mrf.mxu3 }
 0x42d   :  { %v583_v52 = vpop.f32.mrf.mxu2 }
 0x43f   :  { %v623_v14 = vpop.f32.mrf.mxu0 }
 0x440   :  { %v682_v54 = vpop.f32.mrf.mxu2 }
 0x441   :  { %v997_v55 = vpack.i.bf16 %v682_v54, %v581_v50  ;;  %v29_v54 = vld [vmem:[%s1466_s2 + $0x8] sm:$0xff] }
 0x443   :  { %998 = vrot.lane.b32.xlu0 %v997_v55, %s1099_s14 }
 0x447   :  { %v625_v56 = vpop.f32.mrf.mxu0 }
 0x448   :  { %v684_v28 = vpop.f32.mrf.mxu2 }
 0x44e   :  { %v703_v57 = vpop.f32.mrf.mxu3 }
 0x44f   :  { %v1002_v58 = vpack.i.bf16 %v703_v57, %v602_v51  ;;  %v724_v59 = vpop.f32.mrf.mxu0  ;;  %v33_v51 = vpack.c.bf16 %v31_v1, %v30_v41 }
 0x450   :  { %v1007_v60 = vpack.i.bf16 %v724_v59, %v623_v14  ;;  %v28_v14 = vld [vmem:[%s1466_s2] sm:$0xff] }
 0x451   :  { %1003 = vrot.lane.b32.xlu0 %v1002_v58, %s1100_s15  ;;  %825 = vmatpush.bf16.msra.mxu2 %v33_v51  ;;  %v32_v55 = vpack.c.bf16 %v29_v54, %v28_v14  ;;  %v47_v51 = vld [vmem:[%s1467_s3 + $0x50] sm:$0xff] }
 0x455   :  { %826 = vmatpush.bf16.msra.mxu2 %v32_v55 }
 0x456   :  { %v705_v46 = vpop.f32.mrf.mxu3 }
 0x457   :  { %v726_v61 = vpop.f32.mrf.mxu0 }
 0x459   :  { %1008 = vrot.lane.b32.xlu0 %v1007_v60, %s1101_s16 }
 0x462   :  { %v560_v62 = vpop.f32.mrf.mxu1 }
 0x46a   :  { %v562_v15 = vpop.f32.mrf.mxu1 }
 0x489   :  { %v661_v63 = vpop.f32.mrf.mxu1 }
 0x491   :  { %v663_v3 = vpop.f32.mrf.mxu1 }
 0x4b5   :  { %v999_v13 = vpop.permute.xlu0 %998 }
 0x4b6   :  { %v1001_v17 = vunpack.i.h.bf16 %v999_v13  ;;  %v1000_v18 = vunpack.i.l.bf16 %v999_v13  ;;  %v811_v13 = vperm.slane %v1168_v44, 3 }
 0x4b8   :  { %v740_v22 = vsel %vm154_vm8, %v661_v63, %v1001_v17  ;;  %v639_v23 = vsel %vm154_vm8, %v560_v62, %v1000_v18 }
 0x4c3   :  { %v1004_v16 = vpop.permute.xlu0 %1003 }
 0x4c4   :  { %v1006_v19 = vunpack.i.h.bf16 %v1004_v16  ;;  %v1005_v20 = vunpack.i.l.bf16 %v1004_v16 }
 0x4c6   :  { %v641_v12 = vsel %vm640_vm15, %v639_v23, %v1005_v20  ;;  %v741_v24 = vsel %vm640_vm15, %v740_v22, %v1006_v19  ;;  %v1013_v22 = vld [vmem:[%s1466_s2 + $0x20] ss:$0 sm:$0xff]  ;;  %s1102_s2 = smov [#allocation2]  }
 0x4c7   :  { %s945_s13 = sshll.u32 %s1102_s2, 4  ;;  %s946_s13 = int_to_ptr.vmem [resolvable:$true] %s945_s13 }
 0x4cb   :  { %v1009_v21 = vpop.permute.xlu0 %1008 }
 0x4cc   :  { %v1011_v11 = vunpack.i.h.bf16 %v1009_v21  ;;  %v1010_v35 = vunpack.i.l.bf16 %v1009_v21 }
 0x4ce   :  { %v643_v26 = vsel %vm642_vm1, %v641_v12, %v1010_v35  ;;  %v742_v27 = vsel %vm642_vm1, %v741_v24, %v1011_v11  ;;  %v55_v11 = vld [vmem:[%s1467_s3 + $0x90] sm:$0xff] }
 0x4cf   :  { %v743_v29 = vpack.c.bf16 %v742_v27, %v643_v26  ;;  %v53_v26 = vld [vmem:[%s1467_s3 + $0x80] sm:$0xff]  ;;  %v54_v27 = vld [vmem:[%s1467_s3 + $0x88] sm:$0xff] }
 0x4d1   :  { %976 = vmatmul.msk.bf16.vlgmr.msra.gmra.mxu1 %vm66_vm0, %v743_v29 }
 0x54e   :  { %v757_v25 = vpop.f32.mrf.mxu1 }
 0x54f   :  { %v758_v31 = vadd.f32 %v757_v25, %v744_v30 }
 0x551   :  { %v1328_v32 = vadd.f32 %v758_v31, %v1132_v0 }
 0x553   :  { %v764_v33 = vsel %vm66_vm0, %v1328_v32, 0.0 }
 0x554   :  { %765 = vadd.xlane.f32.xlu1 %v764_v33  ;;  %v51_v33 = vld [vmem:[%s1467_s3 + $0x70] sm:$0xff] }
 0x556   :  { %v759_v34 = vpop.f32.mrf.mxu1 }
 0x557   :  { %v760_v36 = vadd.f32 %v759_v34, %v744_v30  ;;  %v63_v30 = vpack.c.bf16 %v54_v27, %v53_v26  ;;  %v52_v34 = vld [vmem:[%s1467_s3 + $0x78] sm:$0xff] }
 0x559   :  { %v1333_v37 = vadd.f32 %v760_v36, %v1139_v2 }
 0x55b   :  { %v767_v38 = vsel %vm66_vm0, %v1333_v37, 0.0 }
 0x55c   :  { %768 = vadd.xlane.f32.xlu0 %v767_v38 }
 0x5c7   :  { %v766_v39 = vpop.xlane.xlu1 %765 }
 0x5c8   :  { %v770_v40 = vmul.f32 %v766_v39, %v1143_v10 }
 0x5ca   :  { %v772_v42 = vsub.f32 %v1328_v32, %v770_v40  ;;  %v62_v40 = vpack.c.bf16 %v52_v34, %v51_v33 }
 0x5cc   :  { %v774_v0 = vmul.f32 %v772_v42, %v772_v42 }
 0x5ce   :  { %v776_v43 = vsel %vm66_vm0, %v774_v0, 0.0 }
 0x5cf   :  { %v769_v45 = vpop.xlane.xlu0 %768  ;;  %777 = vadd.xlane.f32.xlu2 %v776_v43 }
 0x5d0   :  { %v771_v47 = vmul.f32 %v769_v45, %v1143_v10  ;;  %v49_v45 = vld [vmem:[%s1467_s3 + $0x60] sm:$0xff] }
 0x5d2   :  { %v773_v48 = vsub.f32 %v1333_v37, %v771_v47  ;;  %v50_v47 = vld [vmem:[%s1467_s3 + $0x68] sm:$0xff] }
 0x5d4   :  { %v775_v2 = vmul.f32 %v773_v48, %v773_v48 }
 0x5d6   :  { %v779_v49 = vsel %vm66_vm0, %v775_v2, 0.0  ;;  %v61_v2 = vpack.c.bf16 %v50_v47, %v49_v45 }
 0x5d7   :  { %780 = vadd.xlane.f32.xlu1 %v779_v49 }
 0x642   :  { %v778_v50 = vpop.xlane.xlu2 %777 }
 0x643   :  { %v782_v52 = vmul.f32 %v778_v50, %v1143_v10 }
 0x645   :  { %v784_v53 = vadd.f32 1e-05, %v782_v52  ;;  %v48_v52 = vld [vmem:[%s1467_s3 + $0x58] sm:$0xff] }
 0x646   :  { %v60_v14 = vpack.c.bf16 %v48_v52, %v47_v51 }
 0x647   :  { %1052 = vrsqrt.f32 %v784_v53  ;;  %vm792_vm2 = vweird.f32 %v784_v53 }
 0x64a   :  { %v781_v56 = vpop.xlane.xlu1 %780 }
 0x64b   :  { %v783_v28 = vmul.f32 %v781_v56, %v1143_v10  ;;  %v808_v10 = vperm.slane %v1168_v44, 2  ;;  %v56_v44 = vld [vmem:[%s1467_s3 + $0x98] sm:$0xff] }
 0x64c   :  { %v64_v12 = vpack.c.bf16 %v56_v44, %v55_v11 }
 0x64d   :  { %v1053_v57 = vpop.eup %1052  ;;  %v785_v58 = vadd.f32 1e-05, %v783_v28 }
 0x64e   :  { %v787_v59 = vmul.f32 %v1053_v57, %v784_v53  ;;  %vm793_vm8 = vweird.f32 %v1053_v57  ;;  %923 = vmatpush.bf16.msra.mxu3 %v64_v12 }
 0x64f   :  { %1054 = vrsqrt.f32 %v785_v58  ;;  %vm794_vm3 = vmor %vm792_vm2, %vm793_vm8  ;;  %vm802_vm5 = vweird.f32 %v785_v58 }
 0x650   :  { %v788_v46 = vmul.f32 %v1053_v57, %v787_v59  ;;  %v45_v59 = vld [vmem:[%s1467_s3 + $0x40] sm:$0xff] }
 0x652   :  { %v789_v60 = vmul.f32 0.5, %v788_v46  ;;  %924 = vmatpush.bf16.msra.mxu3 %v63_v30  ;;  %v46_v46 = vld [vmem:[%s1467_s3 + $0x48] sm:$0xff] }
 0x654   :  { %v790_v61 = vsub.f32 1.5, %v789_v60 }
 0x655   :  { %v1055_v62 = vpop.eup %1054 }
 0x656   :  { %v791_v15 = vmul.f32 %v1053_v57, %v790_v61  ;;  %v797_v63 = vmul.f32 %v1055_v62, %v785_v58  ;;  %vm803_vm4 = vweird.f32 %v1055_v62  ;;  %925 = vmatpush.bf16.msra.mxu3 %v62_v40  ;;  %v59_v61 = vpack.c.bf16 %v46_v46, %v45_v59 }
 0x657   :  { %vm804_vm6 = vmor %vm802_vm5, %vm803_vm4 }
 0x658   :  { %v798_v3 = vmul.f32 %v1055_v62, %v797_v63  ;;  %v795_v4 = vsel %vm794_vm3, %v1053_v57, %v791_v15 }
 0x659   :  { %v806_v7 = vmul.f32 %v795_v4, %v772_v42 }
 0x65a   :  { %v799_v5 = vmul.f32 0.5, %v798_v3  ;;  %926 = vmatpush.bf16.msra.mxu3 %v61_v2 }
 0x65b   :  { %v809_v16 = vmul.f32 %v808_v10, %v806_v7 }
 0x65c   :  { %v800_v6 = vsub.f32 1.5, %v799_v5 }
 0x65d   :  { %v812_v19 = vadd.f32 %v811_v13, %v809_v16 }
 0x65e   :  { %v801_v8 = vmul.f32 %v1055_v62, %v800_v6  ;;  %927 = vmatpush.bf16.msra.mxu3 %v60_v14  ;;  %v43_v6 = vld [vmem:[%s1467_s3 + $0x30] sm:$0xff] }
 0x660   :  { %v805_v9 = vsel %vm804_vm6, %v1055_v62, %v801_v8 }
 0x661   :  { %v807_v17 = vmul.f32 %v805_v9, %v773_v48 }
 0x662   :  { %928 = vmatpush.bf16.msra.mxu3 %v59_v61 }
 0x663   :  { %v810_v18 = vmul.f32 %v808_v10, %v807_v17  ;;  %v44_v10 = vld [vmem:[%s1467_s3 + $0x38] sm:$0xff] }
 0x664   :  { %v58_v8 = vpack.c.bf16 %v44_v10, %v43_v6 }
 0x665   :  { %v813_v20 = vadd.f32 %v811_v13, %v810_v18 }
 0x666   :  { %929 = vmatpush.bf16.msra.mxu3 %v58_v8 }
 0x667   :  { %v814_v21 = vpack.c.bf16 %v813_v20, %v812_v19  ;;  %v41_v19 = vld [vmem:[%s1467_s3 + $0x20] sm:$0xff]  ;;  %v42_v20 = vld [vmem:[%s1467_s3 + $0x28] sm:$0xff] }
 0x669   :  { %977 = vmatmul.msk.bf16.vlgmr.msra.gmra.mxu2 %vm66_vm0, %v814_v21 }
 0x6ec   :  { %v828_v23 = vpop.f32.mrf.mxu2 }
 0x6ed   :  { %v1369_v35 = vadd.f32 %v1013_v22, %v828_v23 }
 0x6ef   :  { %v1372_v24 = vmul.f32 0.70710677, %v1369_v35  ;;  %v833_v61 = vmul.f32 0.5, %v1369_v35 }
 0x6f1   :  { %v837_v29 = vmul.f32 %v1372_v24, %v1372_v24 }
 0x6f3   :  { %v1382_v25 = vmin.f32 %v837_v29, 16.0 }
 0x6f4   :  { %v830_v31 = vpop.f32.mrf.mxu2 }
 0x6f5   :  { %v839_v36 = vmul.f32 2.1237322e-06, %v1382_v25  ;;  %v850_v38 = vmul.f32 3.8918573e-05, %v1382_v25  ;;  %v1392_v39 = vadd.f32 %v1013_v22, %v830_v31  ;;  %v57_v22 = vpack.c.bf16 %v42_v20, %v41_v19 }
 0x6f7   :  { %v840_v42 = vadd.f32 0.00028619796, %v839_v36  ;;  %v851_v0 = vadd.f32 0.001143296, %v850_v38  ;;  %v1395_v43 = vmul.f32 0.70710677, %v1392_v39  ;;  %930 = vmatpush.bf16.msra.mxu3 %v57_v22 }
 0x6f9   :  { %v852_v48 = vmul.f32 %v851_v0, %v1382_v25  ;;  %v877_v49 = vmul.f32 %v1395_v43, %v1395_v43  ;;  %v841_v41 = vmul.f32 %v840_v42, %v1382_v25 }
 0x6fb   :  { %v853_v1 = vadd.f32 0.014752088, %v852_v48  ;;  %v1407_v50 = vmin.f32 %v877_v49, 16.0  ;;  %v842_v56 = vadd.f32 0.0036580483, %v841_v41 }
 0x6fd   :  { %v854_v53 = vmul.f32 %v853_v1, %v1382_v25  ;;  %v879_v54 = vmul.f32 2.1237322e-06, %v1407_v50  ;;  %v890_v55 = vmul.f32 3.8918573e-05, %v1407_v50  ;;  %v843_v63 = vmul.f32 %v842_v56, %v1382_v25 }
 0x6ff   :  { %v855_v28 = vadd.f32 0.112945676, %v854_v53  ;;  %v880_v57 = vadd.f32 0.00028619796, %v879_v54  ;;  %v891_v58 = vadd.f32 0.001143296, %v890_v55 }
 0x700   :  { %v844_v13 = vadd.f32 0.05243302, %v843_v63 }
 0x701   :  { %v856_v60 = vmul.f32 %v855_v28, %v1382_v25  ;;  %v881_v62 = vmul.f32 %v880_v57, %v1407_v50  ;;  %v892_v15 = vmul.f32 %v891_v58, %v1407_v50 }
 0x702   :  { %v845_v23 = vmul.f32 %v844_v13, %v1382_v25 }
 0x703   :  { %v857_v3 = vadd.f32 0.4994258, %v856_v60  ;;  %v882_v4 = vadd.f32 0.0036580483, %v881_v62  ;;  %v893_v5 = vadd.f32 0.014752088, %v892_v15 }
 0x704   :  { %v846_v27 = vadd.f32 0.18741608, %v845_v23  ;;  %v834_v62 = vmul.f32 0.5, %v1392_v39 }
 0x705   :  { %v858_v7 = vmul.f32 %v857_v3, %v1382_v25  ;;  %v894_v9 = vmul.f32 %v893_v5, %v1407_v50  ;;  %v883_v17 = vmul.f32 %v882_v4, %v1407_v50  ;;  %v1060_v5 = vld [vmem:[%s1467_s3 + $0xa0] sm:$0x3f]  ;;  %s1103_s3 = smov 128  }
 0x706   :  { %v847_v34 = vmul.f32 %v846_v27, %v1382_v25 }
 0x707   :  { %v859_v16 = vadd.f32 1.0, %v858_v7  ;;  %v895_v18 = vadd.f32 0.112945676, %v894_v9  ;;  %v884_v11 = vadd.f32 0.05243302, %v883_v17 }
 0x708   :  { %v848_v45 = vadd.f32 1.1283791, %v847_v34 }
 0x709   :  { %1056 = vrcp.f32 %v859_v16  ;;  %v896_v21 = vmul.f32 %v895_v18, %v1407_v50  ;;  %v885_v30 = vmul.f32 %v884_v11, %v1407_v50  ;;  %v871_v38 = vand.u32 2147483648, %v859_v16 }
 0x70a   :  { %v869_v42 = vand.u32 2147483647, %v859_v16  ;;  %vm865_vm10 = vweird.f32 %v859_v16  ;;  %v849_v51 = vmul.f32 %v848_v45, %v1372_v24 }
 0x70b   :  { %v897_v44 = vadd.f32 0.4994258, %v896_v21  ;;  %v886_v40 = vadd.f32 0.18741608, %v885_v30  ;;  %v872_v2 = vor.u32 1.1754944e-38, %v871_v38 }
 0x70c   :  { %vm870_vm9 = vcmp.eq.f32.partialorder %v869_v42, 8.507059e+37 }
 0x70d   :  { %v898_v12 = vmul.f32 %v897_v44, %v1407_v50  ;;  %v887_v49 = vmul.f32 %v886_v40, %v1407_v50 }
 0x70f   :  { %v1057_v26 = vpop.eup %1056  ;;  %v899_v31 = vadd.f32 1.0, %v898_v12  ;;  %v888_v52 = vadd.f32 1.1283791, %v887_v49 }
 0x710   :  { %v861_v29 = vmul.f32 %v1057_v26, %v859_v16  ;;  %vm866_vm7 = vweird.f32 %v1057_v26 }
 0x711   :  { %1058 = vrcp.f32 %v899_v31  ;;  %vm867_vm11 = vmor %vm865_vm10, %vm866_vm7  ;;  %v911_v53 = vand.u32 2147483648, %v899_v31  ;;  %v909_v55 = vand.u32 2147483647, %v899_v31  ;;  %vm905_vm13 = vweird.f32 %v899_v31 }
 0x712   :  { %v862_v33 = vsub.f32 1.0, %v861_v29  ;;  %v889_v58 = vmul.f32 %v888_v52, %v1395_v43  ;;  %v922_v43 = vperm.slane %v1060_v5, 5 }
 0x713   :  { %v912_v28 = vor.u32 1.1754944e-38, %v911_v53  ;;  %vm910_vm15 = vcmp.eq.f32.partialorder %v909_v55, 8.507059e+37 }
 0x714   :  { %v863_v36 = vmul.f32 %v1057_v26, %v862_v33 }
 0x716   :  { %v864_v0 = vadd.f32 %v1057_v26, %v863_v36 }
 0x717   :  { %v1059_v47 = vpop.eup %1058 }
 0x718   :  { %v868_v48 = vsel %vm867_vm11, %v1057_v26, %v864_v0  ;;  %v901_v41 = vmul.f32 %v1059_v47, %v899_v31  ;;  %vm906_vm12 = vweird.f32 %v1059_v47 }
 0x719   :  { %v873_v1 = vsel %vm870_vm9, %v872_v2, %v868_v48  ;;  %vm907_vm14 = vmor %vm905_vm13, %vm906_vm12 }
 0x71a   :  { %v902_v25 = vsub.f32 1.0, %v901_v41  ;;  %v874_v14 = vmul.f32 %v873_v1, %v849_v51 }
 0x71c   :  { %v903_v54 = vmul.f32 %v1059_v47, %v902_v25  ;;  %v978_v57 = vclamps-f32 %v874_v14, 1.0 }
 0x71e   :  { %v904_v56 = vadd.f32 %v1059_v47, %v903_v54  ;;  %v917_v60 = vadd.f32 1.0, %v978_v57 }
 0x720   :  { %v908_v50 = vsel %vm907_vm14, %v1059_v47, %v904_v56  ;;  %v919_v63 = vmul.f32 %v917_v60, %v833_v61 }
 0x721   :  { %v913_v59 = vsel %vm910_vm15, %v912_v28, %v908_v50 }
 0x722   :  { %v914_v46 = vmul.f32 %v913_v59, %v889_v58 }
 0x724   :  { %v979_v24 = vclamps-f32 %v914_v46, 1.0 }
 0x726   :  { %v918_v15 = vadd.f32 1.0, %v979_v24 }
 0x728   :  { %v920_v3 = vmul.f32 %v918_v15, %v834_v62 }
 0x72a   :  { %v921_v4 = vpack.c.bf16 %v920_v3, %v919_v63 }
 0x72c   :  { %931 = vmatmul.bf16.vlgmr.msra.gmra.mxu3 %v921_v4 }
 0x7af   :  { %v932_v6 = vpop.f32.mrf.mxu3 }
 0x7b0   :  { %v933_v10 = vadd.f32 %v932_v6, %v922_v43 }
 0x7b2   :  { %v937_v7 = vadd.f32 %v933_v10, %v1328_v32 }
 0x7b4   :  { %939 = vst.msk [vmem:[#allocation2] sm:$0xff] %vm66_vm0, %v937_v7 }
 0x7b7   :  { %v934_v35 = vpop.f32.mrf.mxu3 }
 0x7b8   :  { %v935_v39 = vadd.f32 %v934_v35, %v922_v43 }
 0x7ba   :  { %v938_v8 = vadd.f32 %v935_v39, %v1333_v37 }
 0x7bc   :  { %940 = vst.msk [vmem:[#allocation2 + $0x8] sm:$0xff] %vm66_vm0, %v938_v8 }
 0x7bd   :  { %953 = dma.vmem_to_hbm [thread:$0]  %s946_s13, 256, %s948_s17, [#allocation3], %s1103_s3, %s1103_s3, %s1099_s14  }
 0x7be   :  { %1085 = dma.done.wait [#allocation3], 256  }
 0x7bf   :  { %1086 = vsyncadd [#allocation3], 4294967040 }
 0x7c0   :  { %958 = vsyncpa [#allocation3], 1 }

</bundles_post_ra>
